<compile_context>
chip_gen: v5e
topology: v5e:2x2
jax: 0.10.0
libtpu: 0.0.40
codegen_flags: <defaults>
</compile_context>

<pallas_src>
import functools

import jax
import jax.numpy as jnp
from jax import lax
from jax.experimental import pallas as pl
from jax.experimental.pallas import tpu as pltpu


# ---------------------------------------------------------------------------
# Positional encoding (same semantics as the PyTorch helper; batch handled by
# broadcasting inside the kernel, so no repeat over batch is needed).
# ---------------------------------------------------------------------------
def positional_encoding_2d(seq_len: int, hidden_size: int) -> jnp.ndarray:
    pos = jnp.arange(0, seq_len, dtype=jnp.float32)[:, None]              # (S, 1)
    div = jnp.exp(
        jnp.arange(0, hidden_size, 2, dtype=jnp.float32)
        * (-jnp.log(jnp.float32(10000.0)) / hidden_size)
    )                                                                      # (H//2,)
    angles = pos * div[None, :]                                            # (S, H//2)
    return jnp.concatenate([jnp.sin(angles), jnp.cos(angles)], axis=-1)    # (S, H)


# ---------------------------------------------------------------------------
# Pallas kernel.  Grid = (batch blocks, query tiles).
#   qi == 0 : x = inputs + pos ; qkv = x @ W_qkv + b_qkv -> Q/K/V VMEM scratch
#   per query tile : online-softmax loop over KV tiles of the scratch.
# ---------------------------------------------------------------------------
def msa_attention_kernel(x_ref, pos_ref, wqkv_ref, bqkv_ref, o_ref,
                         q_scr, k_scr, v_scr, *,
                         tk, compute_dtype, approx_recip):
    BB, S, Hp = x_ref.shape
    tq = o_ref.shape[1]
    num_kv = S // tk
    qi = pl.program_id(1)

    # One fused Q/K/V projection per batch block (first query tile only); the
    # projected Q/K/V persist in VMEM scratch across the query-tile axis.
    @pl.when(qi == 0)
    def _project():
        x = (x_ref[...] + pos_ref[...]).reshape(BB * S, Hp).astype(compute_dtype)
        qkv = jnp.dot(x, wqkv_ref[...], preferred_element_type=jnp.float32)
        qkv = (qkv + bqkv_ref[...]).astype(compute_dtype).reshape(BB, S, 3 * Hp)
        q_scr[...] = qkv[:, :, 0 * Hp:1 * Hp]
        k_scr[...] = qkv[:, :, 1 * Hp:2 * Hp]
        v_scr[...] = qkv[:, :, 2 * Hp:3 * Hp]

    q_start = pl.multiple_of(qi * tq, tq)
    q = q_scr[:, pl.ds(q_start, tq), :]                       # (BB, tq, Hp)

    def kv_step(ki, carry):
        m, l, acc = carry
        k_start = pl.multiple_of(ki * tk, tk)
        k = k_scr[:, pl.ds(k_start, tk), :]                   # (BB, tk, Hp)
        v = v_scr[:, pl.ds(k_start, tk), :]
        # scores = Q K^T via last-dim contraction (no explicit k.T / XLU copy).
        # NOTE: the PyTorch module does NOT scale by 1/sqrt(H); neither do we.
        s = jnp.einsum('bqh,bkh->bqk', q, k,
                       preferred_element_type=jnp.float32)    # (BB, tq, tk) f32
        m_new = jnp.maximum(m, jnp.max(s, axis=-1, keepdims=True))
        alpha = jnp.exp(m - m_new)
        p = jnp.exp(s - m_new)                                # f32 stable softmax
        l_new = alpha * l + jnp.sum(p, axis=-1, keepdims=True)
        acc_new = alpha * acc + jnp.einsum(
            'bqk,bkh->bqh', p.astype(compute_dtype), v,
            preferred_element_type=jnp.float32)
        return m_new, l_new, acc_new

    m0 = jnp.full((BB, tq, 1), -jnp.inf, dtype=jnp.float32)
    l0 = jnp.zeros((BB, tq, 1), dtype=jnp.float32)
    acc0 = jnp.zeros((BB, tq, Hp), dtype=jnp.float32)
    m, l, acc = lax.fori_loop(0, num_kv, kv_step, (m0, l0, acc0),
                              unroll=(num_kv <= 8))

    # Fold the softmax 1/sum into the small (tq, Hp) epilogue.
    o_ref[...] = (acc * pl.reciprocal(l, approx=approx_recip)).astype(o_ref.dtype)


# ---------------------------------------------------------------------------
# Generation-aware helpers.
# ---------------------------------------------------------------------------
def _device_kind() -> str:
    try:
        return jax.devices()[0].device_kind.lower()
    except Exception:
        return ""


def _vmem_capacity_bytes(kind: str = "") -> int:
    try:
        return int(pltpu.get_tpu_info().vmem_capacity_bytes)
    except Exception:
        pass
    if "v7" in kind:
        return 64 << 20        # v7x: 64 MiB per TensorCore
    return 128 << 20           # v5e / v6e


def _pick_tile(size: int, target: int) -> int:
    """Largest multiple-of-8 divisor of `size` that is <= target (or `size`)."""
    if size <= target:
        return size
    for t in range(target, 7, -1):
        if size % t == 0 and t % 8 == 0:
            return t
    return size  # not cleanly tileable under the (8,128) sublane rule -> untiled


def _estimate_vmem(BB, S, Hp, tq, tk, c_itemsize):
    f = 4
    est = 2 * BB * S * Hp * f                   # x block (double-buffered)
    est += S * Hp * f                           # pos (single-buffered)
    est += Hp * 3 * Hp * c_itemsize             # fused W_qkv (single-buffered)
    est += 3 * Hp * f                           # fused bias
    est += 2 * BB * tq * Hp * f                 # out block (double-buffered)
    est += 3 * BB * S * Hp * c_itemsize         # Q/K/V scratch
    # projection temporaries: (x + pos) f32, cast copy, qkv f32, qkv cast copy
    est += BB * S * Hp * (f + c_itemsize)
    est += BB * S * 3 * Hp * (f + c_itemsize)
    # per-KV-step working set: scores + p (f32) + p cast, flash carries (x2)
    est += BB * tq * tk * (2 * f + c_itemsize)
    est += 2 * BB * tq * (Hp + 2) * f
    return est


# ---------------------------------------------------------------------------
# Wrapper: fuse + pad weights, pad hidden dim to a lane-dense multiple of 128,
# pick generation-aware block_b / tiles / vmem limit, call pallas_call, slice
# the padding off the output.
# ---------------------------------------------------------------------------
def msa_attention(inputs_embeds, wq, bq, wk, bk, wv, bv, *,
                  block_b=None, tq=None, tk=None,
                  compute_dtype=jnp.bfloat16):
    """inputs_embeds: (B, S, H) float32. Weights are PyTorch-style (out, in).

    bf16 MXU inputs (with f32 accumulation and f32 softmax) are the default on
    all generations incl. v5e; pass compute_dtype=jnp.float32 for exact parity.
    """
    B, S, H = inputs_embeds.shape
    f32 = jnp.float32
    Hp = ((H + 127) // 128) * 128               # lane-dense hidden dim
    c_itemsize = jnp.dtype(compute_dtype).itemsize

    kind = _device_kind()
    num_cores = 2 if "v7" in kind else 1        # v7x: 2 TCs/chip (megacore)
    phys_vmem = _vmem_capacity_bytes(kind)
    budget = int(0.85 * phys_vmem)

    if tq is None:
        tq = _pick_tile(S, 256)                 # query tile (grid axis)
    if tk is None:
        tk = _pick_tile(S, 512)                 # KV tile (in-kernel loop)
    assert S % tq == 0 and S % tk == 0
    assert tq % 8 == 0 or tq == S, "query tile must be a multiple of 8 (or == S)"

    if block_b is None:
        # Largest batch block that (a) leaves >= num_cores "parallel" batch
        # steps when possible (keeps both v7x TensorCores busy) and (b) fits
        # the VMEM budget.  On single-TC v5e/v6e this is one big step
        # (amortizes ~0.35us/step and maximizes the MXU M dim = BB*S).
        divisors = [d for d in range(B, 0, -1) if B % d == 0]
        cands = [d for d in divisors if (B // d) >= num_cores] or divisors
        block_b = cands[-1]
        for d in cands:
            if _estimate_vmem(d, S, Hp, tq, tk, c_itemsize) <= budget:
                block_b = d
                break
    assert B % block_b == 0, "block_b must divide B"
    BB = block_b

    def pad_cols(a, width):
        return jnp.pad(a, [(0, 0)] * (a.ndim - 1) + [(0, width - a.shape[-1])])

    def pad_w(w):  # PyTorch-style (out, in) -> transposed (in, out), zero-padded
        return jnp.pad(w.astype(f32).T, [(0, Hp - H), (0, Hp - H)])

    # Fused Q/K/V weight (Hp, 3*Hp) and bias (1, 3*Hp).  Padded rows/cols are
    # zero end-to-end, so the padded output columns are exactly zero.
    wqkv = jnp.concatenate([pad_w(wq), pad_w(wk), pad_w(wv)],
                           axis=1).astype(compute_dtype)
    bqkv = jnp.concatenate([pad_cols(bq.astype(f32)[None, :], Hp),
                            pad_cols(bk.astype(f32)[None, :], Hp),
                            pad_cols(bv.astype(f32)[None, :], Hp)], axis=1)

    x_p = pad_cols(inputs_embeds.astype(f32), Hp)               # (B, S, Hp)
    pos_p = pad_cols(positional_encoding_2d(S, H), Hp)          # (S, Hp)

    est = _estimate_vmem(BB, S, Hp, tq, tk, c_itemsize)
    vmem_limit = min(max(int(est * 1.4), 32 << 20), int(0.9 * phys_vmem))
    # TODO(synk): if 3*BB*S*Hp (the per-batch-block Q/K/V scratch) itself
    # overflows VMEM, split into a projection kernel + an HBM-streamed flash
    # attention kernel instead of the in-VMEM KV loop.

    kernel = functools.partial(
        msa_attention_kernel,
        tk=tk,
        compute_dtype=compute_dtype,
        approx_recip=(compute_dtype != jnp.float32))

    out_p = pl.pallas_call(
        kernel,
        out_shape=jax.ShapeDtypeStruct((B, S, Hp), f32),
        grid_spec=pltpu.PrefetchScalarGridSpec(
            num_scalar_prefetch=0,
            grid=(B // BB, S // tq),
            in_specs=[
                pl.BlockSpec((BB, S, Hp), lambda b, q: (b, 0, 0)),   # inputs
                # Constant-index operands: single-buffered (one VMEM copy).
                pl.BlockSpec((S, Hp), lambda b, q: (0, 0),
                             pipeline_mode=pl.Buffered(1)),          # pos enc
                pl.BlockSpec((Hp, 3 * Hp), lambda b, q: (0, 0),
                             pipeline_mode=pl.Buffered(1)),          # fused W
                pl.BlockSpec((1, 3 * Hp), lambda b, q: (0, 0),
                             pipeline_mode=pl.Buffered(1)),          # fused b
            ],
            out_specs=pl.BlockSpec((BB, tq, Hp), lambda b, q: (b, q, 0)),
            scratch_shapes=[pltpu.VMEM((BB, S, Hp), compute_dtype)
                            for _ in range(3)],                      # Q, K, V
        ),
        compiler_params=pltpu.CompilerParams(
            # Query axis is "arbitrary": the qi==0 projection into scratch must
            # precede the other query tiles of the same batch block.
            dimension_semantics=("parallel", "arbitrary"),
            vmem_limit_bytes=vmem_limit),
    )(x_p, pos_p, wqkv, bqkv)

    return out_p[..., :H]


# ---------------------------------------------------------------------------
# Pure-JAX reference (mirrors the PyTorch forward exactly).
# ---------------------------------------------------------------------------
def msa_attention_ref(x, wq, bq, wk, bk, wv, bv):
    B, S, H = x.shape
    pos = positional_encoding_2d(S, H)[None]                    # (1, S, H)
    xe = x + pos
    q = xe @ wq.T + bq
    k = xe @ wk.T + bk
    v = xe @ wv.T + bv
    scores = jnp.einsum('bqh,bkh->bqk', q, k)
    attn = jax.nn.softmax(scores, axis=2)
    return jnp.einsum('bqk,bkh->bqh', attn, v)


if __name__ == "__main__":
    B, S, H = 2, 8, 32
    key = jax.random.PRNGKey(0)
    kx, kq, kbq, kk, kbk, kv_, kbv = jax.random.split(key, 7)

    # PyTorch nn.Linear default init: U(-1/sqrt(in), 1/sqrt(in)).
    bound = 1.0 / jnp.sqrt(jnp.float32(H))
    wq = jax.random.uniform(kq, (H, H), jnp.float32, -bound, bound)
    bq = jax.random.uniform(kbq, (H,), jnp.float32, -bound, bound)
    wk = jax.random.uniform(kk, (H, H), jnp.float32, -bound, bound)
    bk = jax.random.uniform(kbk, (H,), jnp.float32, -bound, bound)
    wv = jax.random.uniform(kv_, (H, H), jnp.float32, -bound, bound)
    bv = jax.random.uniform(kbv, (H,), jnp.float32, -bound, bound)

    x = jax.random.normal(kx, (B, S, H), jnp.float32)
    ref = msa_attention_ref(x, wq, bq, wk, bk, wv, bv)

    # 1) f32 path (tq == S, single KV step): tight match vs the reference.
    out_f32 = jax.block_until_ready(
        msa_attention(x, wq, bq, wk, bk, wv, bv, compute_dtype=jnp.float32))
    assert out_f32.shape == (B, S, H)
    assert jnp.allclose(out_f32, ref, atol=1e-5, rtol=1e-5), "f32 kernel mismatch"

    # 2) default bf16 MXU path (all generations incl. v5e), f32 softmax/accum.
    out_bf16 = jax.block_until_ready(msa_attention(x, wq, bq, wk, bk, wv, bv))
    assert out_bf16.shape == (B, S, H)
    assert jnp.allclose(out_bf16, ref, atol=1e-1, rtol=1e-1), "bf16 kernel mismatch"

    # 3) tiled path: query-tile grid axis + multi-step online-softmax KV loop.
    S2 = 128
    x2 = jax.random.normal(jax.random.fold_in(kx, 1), (B, S2, H), jnp.float32)
    ref2 = msa_attention_ref(x2, wq, bq, wk, bk, wv, bv)
    out_tiled = jax.block_until_ready(
        msa_attention(x2, wq, bq, wk, bk, wv, bv,
                      tq=32, tk=32, compute_dtype=jnp.float32))
    assert out_tiled.shape == (B, S2, H)
    assert jnp.allclose(out_tiled, ref2, atol=5e-4, rtol=5e-4), "tiled kernel mismatch"

    print("KERNEL_OK")
</pallas_src>

<mosaic_0001>
module attributes {stable_mosaic.version = 11 : i64} {
  func.func @msa_attention_kernel(%arg0: i32, %arg1: i32, %arg2: memref<2x8x128xf32, #tpu.memory_space<vmem>>, %arg3: memref<8x128xf32, #tpu.memory_space<vmem>>, %arg4: memref<128x384xf32, #tpu.memory_space<vmem>>, %arg5: memref<1x384xf32, #tpu.memory_space<vmem>>, %arg6: memref<2x8x128xf32, #tpu.memory_space<vmem>>, %arg7: memref<2x8x128xf32, #tpu.memory_space<vmem>>, %arg8: memref<2x8x128xf32, #tpu.memory_space<vmem>>, %arg9: memref<2x8x128xf32, #tpu.memory_space<vmem>>) attributes {dimension_semantics = [#tpu.dimension_semantics<parallel>, #tpu.dimension_semantics<arbitrary>], iteration_bounds = array<i64: 1, 1>, scalar_prefetch = 0 : i64, scratch_operands = 3 : i64, tpu.core_type = #tpu.core_type<tc>, window_params = [{transform_indices = @transform_0, window_bounds = array<i64: 2, 8, 128>}, {pipeline_mode = #tpu.pipeline_mode<synchronous>, transform_indices = @transform_1, window_bounds = array<i64: 8, 128>}, {pipeline_mode = #tpu.pipeline_mode<synchronous>, transform_indices = @transform_2, window_bounds = array<i64: 128, 384>}, {pipeline_mode = #tpu.pipeline_mode<synchronous>, transform_indices = @transform_3, window_bounds = array<i64: 1, 384>}, {transform_indices = @transform_4, window_bounds = array<i64: 2, 8, 128>}]} {
    %c0_i32 = arith.constant 0 : i32
    %0 = arith.cmpi eq, %arg1, %c0_i32 : i32
    %1 = arith.extui %0 : i1 to i32
    %c0_i32_0 = arith.constant 0 : i32
    %2 = arith.cmpi ne, %1, %c0_i32_0 : i32
    scf.if %2 {
      %c0_17 = arith.constant 0 : index
      %c0_18 = arith.constant 0 : index
      %c0_19 = arith.constant 0 : index
      %37 = vector.load %arg2[%c0_17, %c0_18, %c0_19] : memref<2x8x128xf32, #tpu.memory_space<vmem>>, vector<2x8x128xf32>
      %c0_20 = arith.constant 0 : index
      %c0_21 = arith.constant 0 : index
      %38 = vector.load %arg3[%c0_20, %c0_21] : memref<8x128xf32, #tpu.memory_space<vmem>>, vector<8x128xf32>
      %39 = vector.shape_cast %38 : vector<8x128xf32> to vector<1x8x128xf32>
      %40 = vector.broadcast %39 : vector<1x8x128xf32> to vector<2x8x128xf32>
      %41 = arith.addf %37, %40 : vector<2x8x128xf32>
      %42 = vector.shape_cast %41 : vector<2x8x128xf32> to vector<16x128xf32>
      %c0_22 = arith.constant 0 : index
      %c0_23 = arith.constant 0 : index
      %43 = vector.load %arg4[%c0_22, %c0_23] : memref<128x384xf32, #tpu.memory_space<vmem>>, vector<128x384xf32>
      %cst_24 = arith.constant dense<0.000000e+00> : vector<16x384xf32>
      %44 = tpu.matmul %42, %43, %cst_24 {dimension_numbers = #tpu.dot_dimension_numbers<[1], [0], [0], [1], [0, 0, 1, 1], [], []>} : vector<16x128xf32>, vector<128x384xf32>, vector<16x384xf32> -> vector<16x384xf32>
      %c0_25 = arith.constant 0 : index
      %c0_26 = arith.constant 0 : index
      %45 = vector.load %arg5[%c0_25, %c0_26] : memref<1x384xf32, #tpu.memory_space<vmem>>, vector<1x384xf32>
      %46 = vector.broadcast %45 : vector<1x384xf32> to vector<16x384xf32>
      %47 = arith.addf %44, %46 : vector<16x384xf32>
      %48 = vector.shape_cast %47 : vector<16x384xf32> to vector<2x8x384xf32>
      %49 = vector.extract_strided_slice %48 {offsets = [0, 0, 0], sizes = [2, 8, 128], strides = [1, 1, 1]} : vector<2x8x384xf32> to vector<2x8x128xf32>
      %c0_27 = arith.constant 0 : index
      %c0_28 = arith.constant 0 : index
      %c0_29 = arith.constant 0 : index
      %50 = vector.load %arg7[%c0_27, %c0_28, %c0_29] : memref<2x8x128xf32, #tpu.memory_space<vmem>>, vector<2x8x128xf32>
      tpu.vector_store %arg7[%c0_27, %c0_28, %c0_29], %49 {strides = array<i32>} : memref<2x8x128xf32, #tpu.memory_space<vmem>>, vector<2x8x128xf32>,
      %51 = vector.extract_strided_slice %48 {offsets = [0, 0, 128], sizes = [2, 8, 128], strides = [1, 1, 1]} : vector<2x8x384xf32> to vector<2x8x128xf32>
      %c0_30 = arith.constant 0 : index
      %c0_31 = arith.constant 0 : index
      %c0_32 = arith.constant 0 : index
      %52 = vector.load %arg8[%c0_30, %c0_31, %c0_32] : memref<2x8x128xf32, #tpu.memory_space<vmem>>, vector<2x8x128xf32>
      tpu.vector_store %arg8[%c0_30, %c0_31, %c0_32], %51 {strides = array<i32>} : memref<2x8x128xf32, #tpu.memory_space<vmem>>, vector<2x8x128xf32>,
      %53 = vector.extract_strided_slice %48 {offsets = [0, 0, 256], sizes = [2, 8, 128], strides = [1, 1, 1]} : vector<2x8x384xf32> to vector<2x8x128xf32>
      %c0_33 = arith.constant 0 : index
      %c0_34 = arith.constant 0 : index
      %c0_35 = arith.constant 0 : index
      %54 = vector.load %arg9[%c0_33, %c0_34, %c0_35] : memref<2x8x128xf32, #tpu.memory_space<vmem>>, vector<2x8x128xf32>
      tpu.vector_store %arg9[%c0_33, %c0_34, %c0_35], %53 {strides = array<i32>} : memref<2x8x128xf32, #tpu.memory_space<vmem>>, vector<2x8x128xf32>,
    } else {
    }
    %c8_i32 = arith.constant 8 : i32
    %3 = arith.muli %arg1, %c8_i32 : i32
    %4 = tpu.assume_multiple %3, 8 : i32
    %c0 = arith.constant 0 : index
    %5 = arith.index_cast %4 : i32 to index
    %c0_1 = arith.constant 0 : index
    %6 = vector.load %arg7[%c0, %5, %c0_1] : memref<2x8x128xf32, #tpu.memory_space<vmem>>, vector<2x8x128xf32>
    %cst = arith.constant 0xFF800000 : f32
    %7 = vector.broadcast %cst : f32 to vector<2x8x1xf32>
    %cst_2 = arith.constant 0.000000e+00 : f32
    %8 = vector.broadcast %cst_2 : f32 to vector<2x8x1xf32>
    %cst_3 = arith.constant 0.000000e+00 : f32
    %9 = vector.broadcast %cst_3 : f32 to vector<2x8x128xf32>
    %c0_i32_4 = arith.constant 0 : i32
    %c8_i32_5 = arith.constant 8 : i32
    %10 = arith.muli %c0_i32_4, %c8_i32_5 : i32
    %11 = tpu.assume_multiple %10, 8 : i32
    %c0_6 = arith.constant 0 : index
    %12 = arith.index_cast %11 : i32 to index
    %c0_7 = arith.constant 0 : index
    %13 = vector.load %arg8[%c0_6, %12, %c0_7] : memref<2x8x128xf32, #tpu.memory_space<vmem>>, vector<2x8x128xf32>
    %c0_8 = arith.constant 0 : index
    %14 = arith.index_cast %11 : i32 to index
    %c0_9 = arith.constant 0 : index
    %15 = vector.load %arg9[%c0_8, %14, %c0_9] : memref<2x8x128xf32, #tpu.memory_space<vmem>>, vector<2x8x128xf32>
    "tpu.trace_start"() <{level = 10 : i32, message = "bqh,bkh->bqk"}> : () -> ()
    %cst_10 = arith.constant dense<0.000000e+00> : vector<2x8x8xf32>
    %16 = tpu.matmul %6, %13, %cst_10 {dimension_numbers = #tpu.dot_dimension_numbers<[2], [2], [1], [1], [0, 0, 0, 1, 1, 1], [0], [0]>} : vector<2x8x128xf32>, vector<2x8x128xf32>, vector<2x8x8xf32> -> vector<2x8x8xf32>
    "tpu.trace_stop"() : () -> ()
    %cst_11 = arith.constant dense<0xFF800000> : vector<2x8xf32>
    %17 = vector.multi_reduction <maximumf>, %16, %cst_11 [2] : vector<2x8x8xf32> to vector<2x8xf32>
    %18 = vector.shape_cast %17 : vector<2x8xf32> to vector<2x8x1xf32>
    %19 = arith.maximumf %7, %18 : vector<2x8x1xf32>
    %20 = arith.subf %7, %19 : vector<2x8x1xf32>
    %21 = math.exp %20 : vector<2x8x1xf32>
    %22 = vector.broadcast %19 : vector<2x8x1xf32> to vector<2x8x8xf32>
    %23 = arith.subf %16, %22 : vector<2x8x8xf32>
    %24 = math.exp %23 : vector<2x8x8xf32>
    %25 = arith.mulf %21, %8 : vector<2x8x1xf32>
    %cst_12 = arith.constant dense<0.000000e+00> : vector<2x8xf32>
    %26 = vector.multi_reduction <add>, %24, %cst_12 [2] : vector<2x8x8xf32> to vector<2x8xf32>
    %27 = vector.shape_cast %26 : vector<2x8xf32> to vector<2x8x1xf32>
    %28 = arith.addf %25, %27 : vector<2x8x1xf32>
    %29 = vector.broadcast %21 : vector<2x8x1xf32> to vector<2x8x128xf32>
    %30 = arith.mulf %29, %9 : vector<2x8x128xf32>
    "tpu.trace_start"() <{level = 10 : i32, message = "bqk,bkh->bqh"}> : () -> ()
    %cst_13 = arith.constant dense<0.000000e+00> : vector<2x8x128xf32>
    %31 = tpu.matmul %24, %15, %cst_13 {dimension_numbers = #tpu.dot_dimension_numbers<[2], [1], [1], [2], [0, 0, 0, 1, 1, 2], [0], [0]>} : vector<2x8x8xf32>, vector<2x8x128xf32>, vector<2x8x128xf32> -> vector<2x8x128xf32>
    "tpu.trace_stop"() : () -> ()
    %32 = arith.addf %30, %31 : vector<2x8x128xf32>
    %c1_i32 = arith.constant 1 : i32
    %33 = tpu.reciprocal %28 : vector<2x8x1xf32> -> vector<2x8x1xf32>
    %34 = vector.broadcast %33 : vector<2x8x1xf32> to vector<2x8x128xf32>
    %35 = arith.mulf %32, %34 : vector<2x8x128xf32>
    %c0_14 = arith.constant 0 : index
    %c0_15 = arith.constant 0 : index
    %c0_16 = arith.constant 0 : index
    %36 = vector.load %arg6[%c0_14, %c0_15, %c0_16] : memref<2x8x128xf32, #tpu.memory_space<vmem>>, vector<2x8x128xf32>
    tpu.vector_store %arg6[%c0_14, %c0_15, %c0_16], %35 {strides = array<i32>} : memref<2x8x128xf32, #tpu.memory_space<vmem>>, vector<2x8x128xf32>,
    return
  }
  func.func @transform_0(%arg0: i32, %arg1: i32) -> (i32, i32, i32) {
    %c0_i32 = arith.constant 0 : i32
    %c0_i32_0 = arith.constant 0 : i32
    %c0_i32_1 = arith.constant 0 : i32
    return %arg0, %c0_i32, %c0_i32_0 : i32, i32, i32
  }
  func.func @transform_1(%arg0: i32, %arg1: i32) -> (i32, i32) {
    %c0_i32 = arith.constant 0 : i32
    %c0_i32_0 = arith.constant 0 : i32
    %c0_i32_1 = arith.constant 0 : i32
    return %c0_i32, %c0_i32_0 : i32, i32
  }
  func.func @transform_2(%arg0: i32, %arg1: i32) -> (i32, i32) {
    %c0_i32 = arith.constant 0 : i32
    %c0_i32_0 = arith.constant 0 : i32
    %c0_i32_1 = arith.constant 0 : i32
    return %c0_i32, %c0_i32_0 : i32, i32
  }
  func.func @transform_3(%arg0: i32, %arg1: i32) -> (i32, i32) {
    %c0_i32 = arith.constant 0 : i32
    %c0_i32_0 = arith.constant 0 : i32
    %c0_i32_1 = arith.constant 0 : i32
    return %c0_i32, %c0_i32_0 : i32, i32
  }
  func.func @transform_4(%arg0: i32, %arg1: i32) -> (i32, i32, i32) {
    %c0_i32 = arith.constant 0 : i32
    %c0_i32_0 = arith.constant 0 : i32
    return %arg0, %arg1, %c0_i32 : i32, i32, i32
  }
}

</mosaic_0001>

<bundles_post_ra>
// kernel: tpu_custom_call.1
= control target key start
LH: loop header
LB: loop body
LE: loop exit
PB: predicated region body
PF: predicated region fallthrough
CT: control target
= control target key end

     0   :  { %9 = vsyncpa [#allocation6], 0  ;;  %s607_s0 = inlined_call_operand.hbm [shape: f32[2,8,128], index: 0, kind: input, shape index: {}]   ;;  %s608_s1 = inlined_call_operand.hbm [shape: f32[8,128], index: 1, kind: input, shape index: {}]   ;;  %s609_s2 = inlined_call_operand.hbm [shape: f32[128,384], index: 2, kind: input, shape index: {}]   ;;  %s610_s3 = inlined_call_operand.hbm [shape: f32[1,384], index: 3, kind: input, shape index: {}]   ;;  %s611_s4 = inlined_call_operand.hbm [shape: f32[2,8,128], index: 4, kind: output, shape index: {}]  }
   0x1   :  { %10 = vsyncpa [#allocation9], 0 }
   0x2   :  { %11 = vsyncpa [#allocation12], 0  ;;  %s31_s17 = sshll.u32 %s608_s1, 4  ;;  %s32_s17 = int_to_ptr.hbm [resolvable:$true] %s31_s17 }
   0x3   :  { %12 = vsyncpa [#allocation7], 0  ;;  %s546_s18 = smov [#allocation8]   ;;  %s17_s22 = sshll.u32 %s607_s0, 4  ;;  %s18_s22 = int_to_ptr.hbm [resolvable:$true] %s17_s22 }
   0x4   :  { %s33_s19 = sshll.u32 %s546_s18, 4  ;;  %s547_s23 = smov [#allocation5]   ;;  %s34_s19 = int_to_ptr.vmem [resolvable:$true] %s33_s19 }
   0x5   :  { %36 = dma.hbm_to_vmem [thread:$0]  %s32_s17, 128, %s34_s19, [#allocation9]  }
   0x6   :  { %s19_s24 = sshll.u32 %s547_s23, 4  ;;  %s548_s25 = smov 128   ;;  %s20_s24 = int_to_ptr.vmem [resolvable:$true] %s19_s24 }
   0x7   :  { %s549_s26 = smov 8   ;;  %s41_s28 = sshll.u32 %s609_s2, 4  ;;  %s42_s28 = int_to_ptr.hbm [resolvable:$true] %s41_s28 }
   0x8   :  { %25 = dma.hbm_to_vmem [thread:$0]  %s18_s22, 256, %s20_s24, [#allocation6], %s548_s25, %s548_s25, %s549_s26  }
   0x9   :  { %s550_s29 = smov [#allocation10]   ;;  %s55_s6 = sshll.u32 %s610_s3, 4  ;;  %s56_s6 = int_to_ptr.hbm [resolvable:$true] %s55_s6 }
   0xa   :  { %s43_s30 = sshll.u32 %s550_s29, 4  ;;  %s551_s7 = smov 384   ;;  %s44_s30 = int_to_ptr.vmem [resolvable:$true] %s43_s30 }
   0xb   :  { %s552_s8 = smov 24   ;;  %s553_s9 = smov [#allocation11]  }
   0xc   :  { %49 = dma.hbm_to_vmem [thread:$0]  %s42_s28, 6144, %s44_s30, [#allocation9], %s551_s7, %s551_s7, %s552_s8  }
   0xd   :  { %s57_s10 = sshll.u32 %s553_s9, 4  ;;  %s58_s10 = int_to_ptr.vmem [resolvable:$true] %s57_s10 }
   0xe   :  { %60 = dma.hbm_to_vmem [thread:$0]  %s56_s6, 48, %s58_s10, [#allocation12]  }
   0xf   :  { %538 = dma.done.wait [#allocation6], 256  }
  0x10   :  { %539 = vsyncadd [#allocation6], 4294967040 }
  0x11   :  { %540 = dma.done.wait [#allocation9], 6272  }
  0x12   :  { %541 = vsyncadd [#allocation9], 4294961024 }
  0x13   :  { %542 = dma.done.wait [#allocation12], 48  }
  0x14   :  { %543 = vsyncadd [#allocation12], 4294967248  ;;  %v132_v0 = vld [vmem:[#allocation10 + $0x170] sm:$0xff]  ;;  %v129_v1 = vld [vmem:[#allocation10 + $0x158] sm:$0xff]  ;;  %vm265_vm0 = vcmask 64512   ;;  %s554_s2 = smov [#allocation13]  }
  0x15   :  { %v131_v2 = vld [vmem:[#allocation10 + $0x168] sm:$0xff]  ;;  %165 = vmatpush.msra.mxu1 %v132_v0  ;;  %v128_v3 = vld [vmem:[#allocation10 + $0x150] sm:$0xff]  ;;  %v126_v4 = vld [vmem:[#allocation10 + $0x140] sm:$0xff]  ;;  %s378_s3 = sshll.u32 %s554_s2, 4  ;;  %s380_s13 = sshll.u32 %s611_s4, 4  ;;  %s379_s3 = int_to_ptr.vmem [resolvable:$true] %s378_s3  ;;  %s381_s13 = int_to_ptr.hbm [resolvable:$true] %s380_s13 }
  0x16   :  { %142 = vmatpush.msra.mxu0 %v131_v2  ;;  %v125_v5 = vld [vmem:[#allocation10 + $0x138] sm:$0xff]  ;;  %v123_v6 = vld [vmem:[#allocation10 + $0x128] sm:$0xff]  ;;  %v122_v7 = vld [vmem:[#allocation10 + $0x120] sm:$0xff] }
  0x17   :  { %166 = vmatpush.msra.mxu1 %v129_v1  ;;  %v120_v8 = vld [vmem:[#allocation10 + $0x110] sm:$0xff]  ;;  %v119_v9 = vld [vmem:[#allocation10 + $0x108] sm:$0xff]  ;;  %v117_v10 = vld [vmem:[#allocation10 + $0xf8] sm:$0xff] }
  0x18   :  { %143 = vmatpush.msra.mxu0 %v128_v3  ;;  %v116_v11 = vld [vmem:[#allocation10 + $0xf0] sm:$0xff]  ;;  %v114_v12 = vld [vmem:[#allocation10 + $0xe0] sm:$0xff]  ;;  %v113_v13 = vld [vmem:[#allocation10 + $0xd8] sm:$0xff] }
  0x19   :  { %167 = vmatpush.msra.mxu1 %v126_v4  ;;  %v111_v14 = vld [vmem:[#allocation10 + $0xc8] sm:$0xff]  ;;  %v110_v15 = vld [vmem:[#allocation10 + $0xc0] sm:$0xff]  ;;  %v108_v16 = vld [vmem:[#allocation10 + $0xb0] sm:$0xff] }
  0x1a   :  { %144 = vmatpush.msra.mxu0 %v125_v5  ;;  %v107_v17 = vld [vmem:[#allocation10 + $0xa8] sm:$0xff]  ;;  %v105_v18 = vld [vmem:[#allocation10 + $0x98] sm:$0xff]  ;;  %v104_v19 = vld [vmem:[#allocation10 + $0x90] sm:$0xff] }
  0x1b   :  { %168 = vmatpush.msra.mxu1 %v123_v6  ;;  %v102_v20 = vld [vmem:[#allocation10 + $0x80] sm:$0xff]  ;;  %v101_v21 = vld [vmem:[#allocation10 + $0x78] sm:$0xff]  ;;  %v99_v22 = vld [vmem:[#allocation10 + $0x68] sm:$0xff] }
  0x1c   :  { %145 = vmatpush.msra.mxu0 %v122_v7  ;;  %v98_v23 = vld [vmem:[#allocation10 + $0x60] sm:$0xff]  ;;  %v96_v24 = vld [vmem:[#allocation10 + $0x50] sm:$0xff]  ;;  %v95_v25 = vld [vmem:[#allocation10 + $0x48] sm:$0xff] }
  0x1d   :  { %169 = vmatpush.msra.mxu1 %v120_v8  ;;  %v93_v26 = vld [vmem:[#allocation10 + $0x38] sm:$0xff]  ;;  %v92_v27 = vld [vmem:[#allocation10 + $0x30] sm:$0xff]  ;;  %v81_v28 = vld [vmem:[#allocation5] sm:$0xff] }
  0x1e   :  { %146 = vmatpush.msra.mxu0 %v119_v9  ;;  %v83_v29 = vld [vmem:[#allocation8] sm:$0xff]  ;;  %v90_v30 = vld [vmem:[#allocation10 + $0x20] sm:$0xff]  ;;  %v87_v32 = vld [vmem:[#allocation10 + $0x8] sm:$0xff] }
  0x1f   :  { %170 = vmatpush.msra.mxu1 %v117_v10  ;;  %v89_v31 = vld [vmem:[#allocation10 + $0x18] sm:$0xff]  ;;  %v84_v33 = vadd.f32 %v83_v29, %v81_v28  ;;  %v86_v34 = vld [vmem:[#allocation10] sm:$0xff]  ;;  %v82_v35 = vld [vmem:[#allocation5 + $0x8] sm:$0xff] }
  0x20   :  { %147 = vmatpush.msra.mxu0 %v116_v11  ;;  %v85_v36 = vadd.f32 %v83_v29, %v82_v35  ;;  %v133_v37 = vld [vmem:[#allocation10 + $0x178] sm:$0xff]  ;;  %v130_v38 = vld [vmem:[#allocation10 + $0x160] sm:$0xff]  ;;  %v127_v39 = vld [vmem:[#allocation10 + $0x148] sm:$0xff] }
  0x21   :  { %171 = vmatpush.msra.mxu1 %v114_v12  ;;  %188 = vmatpush.msra.mxu2 %v133_v37  ;;  %v124_v40 = vld [vmem:[#allocation10 + $0x130] sm:$0xff]  ;;  %v121_v41 = vld [vmem:[#allocation10 + $0x118] sm:$0xff]  ;;  %v118_v42 = vld [vmem:[#allocation10 + $0x100] sm:$0xff] }
  0x22   :  { %148 = vmatpush.msra.mxu0 %v113_v13  ;;  %v115_v43 = vld [vmem:[#allocation10 + $0xe8] sm:$0xff]  ;;  %v134_v44 = vld [vmem:[#allocation11] sm:$0x7]  ;;  %v112_v45 = vld [vmem:[#allocation10 + $0xd0] sm:$0xff] }
  0x23   :  { %172 = vmatpush.msra.mxu1 %v111_v14  ;;  %189 = vmatpush.msra.mxu2 %v130_v38  ;;  %v109_v46 = vld [vmem:[#allocation10 + $0xb8] sm:$0xff]  ;;  %v137_v47 = vperm.slane %v134_v44, 1  ;;  %v136_v48 = vperm.slane %v134_v44, 0  ;;  %v106_v49 = vld [vmem:[#allocation10 + $0xa0] sm:$0xff]  ;;  %v103_v52 = vld [vmem:[#allocation10 + $0x88] sm:$0xff]  ;;  %v138_v4 = vperm.slane %v134_v44, 2 }
  0x24   :  { %149 = vmatpush.msra.mxu0 %v110_v15  ;;  %v100_v55 = vld [vmem:[#allocation10 + $0x70] sm:$0xff]  ;;  %v97_v56 = vld [vmem:[#allocation10 + $0x58] sm:$0xff]  ;;  %v94_v57 = vld [vmem:[#allocation10 + $0x40] sm:$0xff] }
  0x25   :  { %173 = vmatpush.msra.mxu1 %v108_v16  ;;  %190 = vmatpush.msra.mxu2 %v127_v39  ;;  %v91_v60 = vld [vmem:[#allocation10 + $0x28] sm:$0xff]  ;;  %v88_v63 = vld [vmem:[#allocation10 + $0x10] sm:$0xff] }
  0x26   :  { %150 = vmatpush.msra.mxu0 %v107_v17 }
  0x27   :  { %174 = vmatpush.msra.mxu1 %v105_v18  ;;  %191 = vmatpush.msra.mxu2 %v124_v40 }
  0x28   :  { %151 = vmatpush.msra.mxu0 %v104_v19 }
  0x29   :  { %175 = vmatpush.msra.mxu1 %v102_v20  ;;  %192 = vmatpush.msra.mxu2 %v121_v41 }
  0x2a   :  { %152 = vmatpush.msra.mxu0 %v101_v21 }
  0x2b   :  { %176 = vmatpush.msra.mxu1 %v99_v22  ;;  %193 = vmatpush.msra.mxu2 %v118_v42 }
  0x2c   :  { %153 = vmatpush.msra.mxu0 %v98_v23 }
  0x2d   :  { %177 = vmatpush.msra.mxu1 %v96_v24  ;;  %194 = vmatpush.msra.mxu2 %v115_v43 }
  0x2e   :  { %154 = vmatpush.msra.mxu0 %v95_v25 }
  0x2f   :  { %178 = vmatpush.msra.mxu1 %v93_v26  ;;  %195 = vmatpush.msra.mxu2 %v112_v45 }
  0x30   :  { %155 = vmatpush.msra.mxu0 %v92_v27 }
  0x31   :  { %179 = vmatpush.msra.mxu1 %v90_v30  ;;  %196 = vmatpush.msra.mxu2 %v109_v46 }
  0x32   :  { %156 = vmatpush.msra.mxu0 %v89_v31 }
  0x33   :  { %180 = vmatpush.msra.mxu1 %v87_v32  ;;  %197 = vmatpush.msra.mxu2 %v106_v49 }
  0x34   :  { %157 = vmatpush.msra.mxu0 %v86_v34  ;;  %181 = vmatmul.f32.vlgmr.msra.gmra.mxu1 %v84_v33 }
  0x35   :  { %158 = vmatmul.f32.vlgmr.msra.gmra.mxu0 %v84_v33  ;;  %198 = vmatpush.msra.mxu2 %v103_v52 }
  0x37   :  { %199 = vmatpush.msra.mxu2 %v100_v55 }
  0x39   :  { %200 = vmatpush.msra.mxu2 %v97_v56 }
  0x3b   :  { %201 = vmatpush.msra.mxu2 %v94_v57 }
  0x3c   :  { %184 = vmatmul.f32.gmra.mxu1 %v85_v36 }
  0x3d   :  { %161 = vmatmul.f32.gmra.mxu0 %v85_v36  ;;  %202 = vmatpush.msra.mxu2 %v91_v60 }
  0x3f   :  { %203 = vmatpush.msra.mxu2 %v88_v63 }
  0x40   :  { %204 = vmatmul.f32.vlgmr.msra.gmra.mxu2 %v84_v33 }
  0x48   :  { %207 = vmatmul.f32.gmra.mxu2 %v85_v36 }
  0xb1   :  { %v182_v50 = vpop.f32.mrf.mxu1 }
  0xb2   :  { %v159_v51 = vpop.f32.mrf.mxu0  ;;  %v183_v53 = vadd.f32 %v182_v50, %v137_v47 }
  0xb3   :  { %v160_v54 = vadd.f32 %v159_v51, %v136_v48 }
  0xb4   :  { %240 = vmatpush.xpose.msra.mxu3 %v183_v53 }
  0xb7   :  { %241 = vmatmul.f32.vlgmr.msra.gmra.mxu3 %v160_v54 }
  0xb9   :  { %v185_v58 = vpop.f32.mrf.mxu1 }
  0xba   :  { %v162_v59 = vpop.f32.mrf.mxu0  ;;  %v186_v61 = vadd.f32 %v185_v58, %v137_v47 }
  0xbb   :  { %v163_v62 = vadd.f32 %v162_v59, %v136_v48 }
  0xbc   :  { %260 = vmatpush.xpose.msrb.mxu3 %v186_v61 }
  0xbf   :  { %261 = vmatmul.f32.vlgmr.msrb.gmra.mxu3 %v163_v62 }
  0xc3   :  { %v205_v5 = vpop.f32.mrf.mxu2 }
  0xc4   :  { %v206_v6 = vadd.f32 %v205_v5, %v138_v4 }
  0xc6   :  { %312 = vmatpush.msra.mxu3 %v206_v6 }
  0xcb   :  { %v208_v7 = vpop.f32.mrf.mxu2 }
  0xcc   :  { %v209_v8 = vadd.f32 %v208_v7, %v138_v4 }
  0xce   :  { %335 = vmatpush.msrb.mxu3 %v209_v8 }
 0x13a   :  { %v242_v0 = vpop.f32.mrf.mxu3 }
 0x13b   :  { %v266_v1 = vsel %vm265_vm0, %v242_v0, -inf }
 0x13c   :  { %267 = vmax.xlane.f32.xlu0 %v266_v1 }
 0x142   :  { %v262_v2 = vpop.f32.mrf.mxu3 }
 0x143   :  { %v269_v3 = vsel %vm265_vm0, %v262_v2, -inf }
 0x144   :  { %270 = vmax.xlane.f32.xlu0 %v269_v3 }
 0x1af   :  { %v268_v9 = vpop.xlane.xlu0 %267 }
 0x1b0   :  { %v278_v10 = vsub.f32 %v242_v0, %v268_v9  ;;  %v272_v19 = vsub.f32 -inf, %v268_v9 }
 0x1b2   :  { %v280_v11 = vmul.f32 1.442695, %v278_v10  ;;  %v274_v20 = vmul.f32 1.442695, %v272_v19 }
 0x1b4   :  { %406 = vpow2.f32 %v280_v11 }
 0x1b7   :  { %v271_v12 = vpop.xlane.xlu0 %270 }
 0x1b8   :  { %v279_v13 = vsub.f32 %v262_v2, %v271_v12  ;;  %v273_v21 = vsub.f32 -inf, %v271_v12 }
 0x1ba   :  { %v282_v14 = vmul.f32 1.442695, %v279_v13  ;;  %v407_v15 = vpop.eup %406  ;;  %v276_v22 = vmul.f32 1.442695, %v273_v21 }
 0x1bb   :  { %395 = vmatmul.msk.f32.vlgmr.msra.gmra.mxu3 %vm265_vm0, %v407_v15  ;;  %v286_v16 = vsel %vm265_vm0, %v407_v15, 0.0 }
 0x1bc   :  { %408 = vpow2.f32 %v282_v14  ;;  %287 = vadd.xlane.f32.xlu1 %v286_v16 }
 0x1bd   :  { %410 = vpow2.f32 %v274_v20 }
 0x1be   :  { %412 = vpow2.f32 %v276_v22 }
 0x1c2   :  { %v409_v17 = vpop.eup %408 }
 0x1c3   :  { %396 = vmatmul.msk.f32.vlgmr.msrb.gmra.mxu3 %vm265_vm0, %v409_v17  ;;  %v289_v18 = vsel %vm265_vm0, %v409_v17, 0.0  ;;  %v411_v23 = vpop.eup %410 }
 0x1c4   :  { %290 = vadd.xlane.f32.xlu1 %v289_v18  ;;  %v284_v24 = vmul.f32 0.0, %v411_v23  ;;  %v413_v27 = vpop.eup %412 }
 0x1c5   :  { %v285_v28 = vmul.f32 0.0, %v413_v27 }
 0x22f   :  { %v288_v25 = vpop.xlane.xlu1 %287 }
 0x230   :  { %v292_v26 = vadd.f32 %v288_v25, %v284_v24 }
 0x232   :  { %414 = vrcp.f32 %v292_v26  ;;  %v353_v34 = vand.u32 2147483648, %v292_v26  ;;  %v351_v36 = vand.u32 2147483647, %v292_v26  ;;  %vm347_vm2 = vweird.f32 %v292_v26 }
 0x234   :  { %v354_v40 = vor.u32 1.1754944e-38, %v353_v34  ;;  %vm352_vm4 = vcmp.eq.f32.partialorder %v351_v36, 8.507059e+37 }
 0x237   :  { %v291_v29 = vpop.xlane.xlu1 %290 }
 0x238   :  { %v415_v30 = vpop.eup %414  ;;  %v293_v31 = vadd.f32 %v291_v29, %v285_v28 }
 0x239   :  { %v343_v32 = vmul.f32 %v415_v30, %v292_v26  ;;  %vm348_vm1 = vweird.f32 %v415_v30 }
 0x23a   :  { %416 = vrcp.f32 %v293_v31  ;;  %vm349_vm3 = vmor %vm347_vm2, %vm348_vm1  ;;  %v367_v47 = vand.u32 2147483648, %v293_v31  ;;  %v365_v49 = vand.u32 2147483647, %v293_v31  ;;  %vm361_vm6 = vweird.f32 %v293_v31 }
 0x23b   :  { %v344_v33 = vsub.f32 1.0, %v343_v32 }
 0x23c   :  { %v368_v52 = vor.u32 1.1754944e-38, %v367_v47  ;;  %vm366_vm8 = vcmp.eq.f32.partialorder %v365_v49, 8.507059e+37 }
 0x23d   :  { %v345_v35 = vmul.f32 %v415_v30, %v344_v33 }
 0x23e   :  { %v314_v37 = vpop.f32.mrf.mxu3 }
 0x23f   :  { %v346_v38 = vadd.f32 %v415_v30, %v345_v35  ;;  %v340_v42 = vadd.f32 %v314_v37, %v284_v24 }
 0x240   :  { %v417_v39 = vpop.eup %416 }
 0x241   :  { %v357_v41 = vmul.f32 %v417_v39, %v293_v31  ;;  %v350_v43 = vsel %vm349_vm3, %v415_v30, %v346_v38  ;;  %vm362_vm5 = vweird.f32 %v417_v39 }
 0x242   :  { %v355_v44 = vsel %vm352_vm4, %v354_v40, %v350_v43  ;;  %vm363_vm7 = vmor %vm361_vm6, %vm362_vm5 }
 0x243   :  { %v358_v45 = vsub.f32 1.0, %v357_v41  ;;  %v370_v46 = vmul.f32 %v355_v44, %v340_v42 }
 0x245   :  { %372 = vst [vmem:[#allocation13] sm:$0xff] %v370_v46  ;;  %v359_v48 = vmul.f32 %v417_v39, %v358_v45 }
 0x246   :  { %v337_v50 = vpop.f32.mrf.mxu3 }
 0x247   :  { %v360_v51 = vadd.f32 %v417_v39, %v359_v48  ;;  %v341_v53 = vadd.f32 %v337_v50, %v285_v28 }
 0x249   :  { %v364_v54 = vsel %vm363_vm7, %v417_v39, %v360_v51 }
 0x24a   :  { %v369_v55 = vsel %vm366_vm8, %v368_v52, %v364_v54 }
 0x24b   :  { %v371_v56 = vmul.f32 %v369_v55, %v341_v53 }
 0x24d   :  { %373 = vst [vmem:[#allocation13 + $0x8] sm:$0xff] %v371_v56 }
 0x24e   :  { %386 = dma.vmem_to_hbm [thread:$0]  %s379_s3, 256, %s381_s13, [#allocation7], %s548_s25, %s548_s25, %s549_s26  }
 0x24f   :  { %544 = dma.done.wait [#allocation7], 256  }
 0x250   :  { %545 = vsyncadd [#allocation7], 4294967040 }
 0x251   :  { %391 = vsyncpa [#allocation6], 1 }
 0x252   :  { %392 = vsyncpa [#allocation9], 1 }
 0x253   :  { %393 = vsyncpa [#allocation12], 1 }
 0x254   :  { %394 = vsyncpa [#allocation7], 1 }

</bundles_post_ra>
